<compile_context>
chip_gen: v6e
topology: v6e:2x2x1
jax: 0.10.0
libtpu: 0.0.40
codegen_flags: <defaults>
</compile_context>

<pallas_src>
import jax
import jax.numpy as jnp
from jax.experimental import pallas as pl
from jax.experimental.pallas import tpu as pltpu


def dqn_kernel(xt_ref, w1t_ref, b1_ref, w2t_ref, b2_ref, ot_ref):
    # First linear + ReLU, batch on lanes:
    #   (hidden, in_f) @ (in_f, block_b) -> (hidden, block_b), f32 accumulate.
    h = jnp.dot(w1t_ref[...], xt_ref[...], preferred_element_type=jnp.float32)
    h = jnp.maximum(h + b1_ref[...], 0.0)          # b1 is (hidden, 1), lane-broadcast
    # Second linear:
    #   (out_f, hidden) @ (hidden, block_b) -> (out_f, block_b), f32 accumulate.
    y = jnp.dot(w2t_ref[...], h.astype(w2t_ref.dtype),
                preferred_element_type=jnp.float32)
    ot_ref[...] = (y + b2_ref[...]).astype(ot_ref.dtype)   # lane-dense store


def _pick_block_b(batch):
    """Largest lane-aligned (multiple of 128) batch tile <= 8192 dividing batch,
    preferring >= 2 grid steps (pipelining + v7x dual-TC). Tiny/odd batches fall
    back to a single full tile."""
    if batch % 128 == 0:
        for cand in (8192, 4096, 2048, 1024, 512, 256, 128):
            if batch % cand == 0 and batch // cand >= 2:
                return cand
    return batch


def dqn_forward(x, w1, b1, w2, b2, *, block_b=None, param_dtype=jnp.bfloat16):
    """DQNNet forward with a Pallas kernel.

    x : (B, in_features) float32
    w1: (in_features, 128), b1: (1, 128)      (already transposed vs. PyTorch)
    w2: (128, out_features), b2: (1, out_features)
    Returns (B, out_features) float32.
    """
    B, in_f = x.shape
    hidden = w1.shape[1]
    out_f = w2.shape[1]

    if block_b is None:
        block_b = _pick_block_b(B)
    assert B % block_b == 0
    grid = (B // block_b,)

    # Batch-on-lanes layout + bf16 inputs (f32 accumulate preserved in-kernel).
    xt = x.T.astype(param_dtype)                 # (in_f, B)
    w1t = w1.T.astype(param_dtype)               # (hidden, in_f)
    w2t = w2.T.astype(param_dtype)               # (out_f, hidden)
    b1c = b1.T.astype(jnp.float32)               # (hidden, 1)
    b2c = b2.T.astype(jnp.float32)               # (out_f, 1)

    yt = pl.pallas_call(
        dqn_kernel,
        out_shape=jax.ShapeDtypeStruct((out_f, B), jnp.float32),
        grid_spec=pltpu.PrefetchScalarGridSpec(
            num_scalar_prefetch=0,
            grid=grid,
            in_specs=[
                pl.BlockSpec((in_f, block_b), lambda i: (0, i)),   # x.T tile
                pl.BlockSpec((hidden, in_f), lambda i: (0, 0)),    # W1.T (resident)
                pl.BlockSpec((hidden, 1), lambda i: (0, 0)),       # b1
                pl.BlockSpec((out_f, hidden), lambda i: (0, 0)),   # W2.T (resident)
                pl.BlockSpec((out_f, 1), lambda i: (0, 0)),        # b2
            ],
            out_specs=pl.BlockSpec((out_f, block_b), lambda i: (0, i)),
        ),
        compiler_params=pltpu.CompilerParams(
            dimension_semantics=("parallel",),   # shards grid across v7x's 2 TCs
        ),
    )(xt, w1t, b1c, w2t, b2c)

    return yt.T.astype(x.dtype)                  # back to (B, out_f)


def init_params(key, in_features, hidden, out_features):
    """Deterministic PyTorch-Linear-style init (uniform +/- 1/sqrt(fan_in))."""
    k1, k2, k3, k4 = jax.random.split(key, 4)
    bound1 = 1.0 / (in_features ** 0.5)
    bound2 = 1.0 / (hidden ** 0.5)
    w1 = jax.random.uniform(k1, (in_features, hidden), jnp.float32,
                            -bound1, bound1)
    b1 = jax.random.uniform(k2, (1, hidden), jnp.float32, -bound1, bound1)
    w2 = jax.random.uniform(k3, (hidden, out_features), jnp.float32,
                            -bound2, bound2)
    b2 = jax.random.uniform(k4, (1, out_features), jnp.float32,
                            -bound2, bound2)
    return w1, b1, w2, b2


if __name__ == "__main__":
    # Small shapes consistent with DQNNet(input=16, output=4).
    # B=256 -> block_b=128, grid=(2,): exercises tiling / pipelining path.
    B, IN_F, HIDDEN, OUT_F = 256, 16, 128, 4

    key = jax.random.PRNGKey(0)
    kx, kp = jax.random.split(key)
    x = jax.random.normal(kx, (B, IN_F), jnp.float32)
    w1, b1, w2, b2 = init_params(kp, IN_F, HIDDEN, OUT_F)

    y = dqn_forward(x, w1, b1, w2, b2)
    y = jax.block_until_ready(y)
    assert y.shape == (B, OUT_F)

    # Reference mirroring the kernel's bf16-input / f32-accumulate math.
    bf = lambda a: a.astype(jnp.bfloat16).astype(jnp.float32)
    h_ref = jnp.maximum(bf(x) @ bf(w1) + b1, 0.0)
    ref = bf(h_ref) @ bf(w2) + b2
    assert jnp.allclose(y, ref, atol=1e-2, rtol=1e-2), (
        float(jnp.max(jnp.abs(y - ref))))

    # Sanity vs. full-f32 math (loose tolerance for bf16 inputs).
    ref_f32 = jnp.maximum(x @ w1 + b1, 0.0) @ w2 + b2
    assert jnp.allclose(y, ref_f32, atol=5e-2, rtol=5e-2)

    print("KERNEL_OK")
</pallas_src>

<mosaic_0001>
module attributes {stable_mosaic.version = 11 : i64} {
  func.func @dqn_kernel(%arg0: i32, %arg1: memref<16x128xbf16, #tpu.memory_space<vmem>>, %arg2: memref<128x16xbf16, #tpu.memory_space<vmem>>, %arg3: memref<128x1xf32, #tpu.memory_space<vmem>>, %arg4: memref<4x128xbf16, #tpu.memory_space<vmem>>, %arg5: memref<4x1xf32, #tpu.memory_space<vmem>>, %arg6: memref<4x128xf32, #tpu.memory_space<vmem>>) attributes {dimension_semantics = [#tpu.dimension_semantics<parallel>], iteration_bounds = array<i64: 2>, scalar_prefetch = 0 : i64, scratch_operands = 0 : i64, tpu.core_type = #tpu.core_type<tc>, window_params = [{transform_indices = @transform_0, window_bounds = array<i64: 16, 128>}, {pipeline_mode = #tpu.pipeline_mode<synchronous>, transform_indices = @transform_1, window_bounds = array<i64: 128, 16>}, {pipeline_mode = #tpu.pipeline_mode<synchronous>, transform_indices = @transform_2, window_bounds = array<i64: 128, 1>}, {pipeline_mode = #tpu.pipeline_mode<synchronous>, transform_indices = @transform_3, window_bounds = array<i64: 4, 128>}, {pipeline_mode = #tpu.pipeline_mode<synchronous>, transform_indices = @transform_4, window_bounds = array<i64: 4, 1>}, {transform_indices = @transform_5, window_bounds = array<i64: 4, 128>}]} {
    %c0 = arith.constant 0 : index
    %c0_0 = arith.constant 0 : index
    %0 = vector.load %arg2[%c0, %c0_0] : memref<128x16xbf16, #tpu.memory_space<vmem>>, vector<128x16xbf16>
    %c0_1 = arith.constant 0 : index
    %c0_2 = arith.constant 0 : index
    %1 = vector.load %arg1[%c0_1, %c0_2] : memref<16x128xbf16, #tpu.memory_space<vmem>>, vector<16x128xbf16>
    %cst = arith.constant dense<0.000000e+00> : vector<128x128xf32>
    %2 = tpu.matmul %0, %1, %cst {dimension_numbers = #tpu.dot_dimension_numbers<[1], [0], [0], [1], [0, 0, 1, 1], [], []>} : vector<128x16xbf16>, vector<16x128xbf16>, vector<128x128xf32> -> vector<128x128xf32>
    %c0_3 = arith.constant 0 : index
    %c0_4 = arith.constant 0 : index
    %3 = vector.load %arg3[%c0_3, %c0_4] : memref<128x1xf32, #tpu.memory_space<vmem>>, vector<128x1xf32>
    %4 = vector.broadcast %3 : vector<128x1xf32> to vector<128x128xf32>
    %5 = arith.addf %2, %4 : vector<128x128xf32>
    %cst_5 = arith.constant 0.000000e+00 : f32
    %6 = vector.broadcast %cst_5 : f32 to vector<128x128xf32>
    %7 = arith.maximumf %5, %6 : vector<128x128xf32>
    %c0_6 = arith.constant 0 : index
    %c0_7 = arith.constant 0 : index
    %8 = vector.load %arg4[%c0_6, %c0_7] : memref<4x128xbf16, #tpu.memory_space<vmem>>, vector<4x128xbf16>
    %9 = arith.truncf %7 : vector<128x128xf32> to vector<128x128xbf16>
    %cst_8 = arith.constant dense<0.000000e+00> : vector<4x128xf32>
    %10 = tpu.matmul %8, %9, %cst_8 {dimension_numbers = #tpu.dot_dimension_numbers<[1], [0], [0], [1], [0, 0, 1, 1], [], []>} : vector<4x128xbf16>, vector<128x128xbf16>, vector<4x128xf32> -> vector<4x128xf32>
    %c0_9 = arith.constant 0 : index
    %c0_10 = arith.constant 0 : index
    %11 = vector.load %arg5[%c0_9, %c0_10] : memref<4x1xf32, #tpu.memory_space<vmem>>, vector<4x1xf32>
    %12 = vector.broadcast %11 : vector<4x1xf32> to vector<4x128xf32>
    %13 = arith.addf %10, %12 : vector<4x128xf32>
    %c0_11 = arith.constant 0 : index
    %c0_12 = arith.constant 0 : index
    %14 = vector.load %arg6[%c0_11, %c0_12] : memref<4x128xf32, #tpu.memory_space<vmem>>, vector<4x128xf32>
    tpu.vector_store %arg6[%c0_11, %c0_12], %13 {strides = array<i32>} : memref<4x128xf32, #tpu.memory_space<vmem>>, vector<4x128xf32>,
    return
  }
  func.func @transform_0(%arg0: i32) -> (i32, i32) {
    %c0_i32 = arith.constant 0 : i32
    %c0_i32_0 = arith.constant 0 : i32
    return %c0_i32, %arg0 : i32, i32
  }
  func.func @transform_1(%arg0: i32) -> (i32, i32) {
    %c0_i32 = arith.constant 0 : i32
    %c0_i32_0 = arith.constant 0 : i32
    %c0_i32_1 = arith.constant 0 : i32
    return %c0_i32, %c0_i32_0 : i32, i32
  }
  func.func @transform_2(%arg0: i32) -> (i32, i32) {
    %c0_i32 = arith.constant 0 : i32
    %c0_i32_0 = arith.constant 0 : i32
    %c0_i32_1 = arith.constant 0 : i32
    return %c0_i32, %c0_i32_0 : i32, i32
  }
  func.func @transform_3(%arg0: i32) -> (i32, i32) {
    %c0_i32 = arith.constant 0 : i32
    %c0_i32_0 = arith.constant 0 : i32
    %c0_i32_1 = arith.constant 0 : i32
    return %c0_i32, %c0_i32_0 : i32, i32
  }
  func.func @transform_4(%arg0: i32) -> (i32, i32) {
    %c0_i32 = arith.constant 0 : i32
    %c0_i32_0 = arith.constant 0 : i32
    %c0_i32_1 = arith.constant 0 : i32
    return %c0_i32, %c0_i32_0 : i32, i32
  }
  func.func @transform_5(%arg0: i32) -> (i32, i32) {
    %c0_i32 = arith.constant 0 : i32
    %c0_i32_0 = arith.constant 0 : i32
    return %c0_i32, %arg0 : i32, i32
  }
}

</mosaic_0001>

<bundles_post_ra>
// kernel: tpu_custom_call.1
= control target key start
LH: loop header
LB: loop body
LE: loop exit
PB: predicated region body
PF: predicated region fallthrough
CT: control target
= control target key end

     0   :  { %10 = vsyncpa [#allocation4], 0  ;;  %s1151_s0 = inlined_call_operand.vmem [shape: bf16[16,256], index: 0, kind: input, shape index: {}]   ;;  %s1152_s1 = inlined_call_operand.vmem [shape: bf16[128,16], index: 1, kind: input, shape index: {}]   ;;  %s1153_s2 = inlined_call_operand.vmem [shape: f32[128,1], index: 2, kind: input, shape index: {}]   ;;  %s1154_s3 = inlined_call_operand.vmem [shape: bf16[4,128], index: 3, kind: input, shape index: {}]   ;;  %s1155_s4 = inlined_call_operand.vmem [shape: f32[4,1], index: 4, kind: input, shape index: {}]   ;;  %s1156_s5 = inlined_call_operand.hbm [shape: f32[4,256], index: 5, kind: output, shape index: {}]  }
   0x1   :  { %12 = vsyncpa [#allocation4 + $0x1], 0  ;;  %s938_s18 = smov 0   ;;  %s940_s19 = smov 0  }
   0x2   :  { %s942_s20 = smov 0   ;;  %s944_s21 = smov 0  }
   0x3 LB: > { %s703_s22 = sadd.s32 4294967295, %s902_s21   ;;  %s704_s23 = sadd.s32 4294967294, %s902_s21   ;;  %s902_s21 = sphi %s944_s21, %s1162_s21   ;;  %s898_s20 = sphi %s942_s20, %s1161_s20   ;;  %s894_s19 = sphi %s940_s19, %s1160_s19   ;;  %s890_s18 = sphi %s938_s18, %s1159_s18  }
   0x4   : > { %s961_s24 = sadd.s32 1, %s902_s21   ;;  %s25_s25 = sadd.s32 1, %s898_s20 }
   0x5   : > { %s22_s26 = ssub.s32 %s902_s21, %s961_s24  ;;  %p32_p0 = scmp.ne.s32.totalorder %s898_s20, %s894_s19 }
   0x6   : > { %p23_p1 = scmp.eq.s32.totalorder %s22_s26, 0  ;;  %p33_p2 = scmp.eq.s32.totalorder %s902_s21, 0 }
   0x7   : > { %p146_p3 = scmp.eq.s32.totalorder %s703_s22, 1  ;;  %p151_p4 = scmp.ne.s32.totalorder %s894_s19, %s890_s18 }
   0x8   : > { %s974_s27 = scalar_select %p23_p1, %s898_s20, %s25_s25  }
   0x9   : > { %p34_p5 = por %p33_p2, %p32_p0  ;;  %p976_p6 = por %p146_p3, %p32_p0 }
   0xa   : > { %p152_p7 = scmp.eq.s32.totalorder %s704_s23, 1  ;;  %p706_p9 = scmp.ge.s32.totalorder %s902_s21, 2 }
   0xc   : > { %p980_p8 = por %p152_p7, %p151_p4  ;;  %180 = sbr.rel (%p706_p9) target bundleno = 22 (0x16), region = 32 }
  0x11   : > { %183 = sbr.rel (!%p34_p5) target bundleno = 22 (0x16), region = 36  ;;  %s185_s30 = sand.u32 (%p34_p5), 1, %s898_s20  }
  0x12   : > { %s708_s6 = sshll.u32 (%p34_p5), %s902_s21, 2  ;;  %s707_s7 = sshll.u32 (%p34_p5), %s185_s30, 3 }
  0x13   : > { %s189_s10 = scalar_lea.vmem (%p34_p5), %s1151_s0, %s708_s6  ;;  %s187_s11 = scalar_lea.vmem (%p34_p5), [#allocation2], %s707_s7 }
  0x14   : > { %v206_v0 = vld [vmem:[%s189_s10] sm:$0xf] (%p34_p5)  ;;  %v208_v1 = vld [vmem:[%s189_s10 + $0x8] sm:$0xf] (%p34_p5) }
  0x15   : > { %207 = vst [vmem:[%s187_s11] sm:$0xf] (%p34_p5), %v206_v0  ;;  %209 = vst [vmem:[%s187_s11 + $0x4] sm:$0xf] (%p34_p5), %v208_v1 }
  0x16 PF: > { %p709_p10 = scmp.ge.s32.totalorder %s902_s21, 1  ;;  %p236_p11 = scmp.lt.s32.totalorder %s902_s21, 3 }
  0x18   : > { %p237_p12 = pnand %p709_p10, %p236_p11 }
  0x19   : > { %s995_s12 = sand.u32 (!%p237_p12), 1, %s894_s19   ;;  %s730_s7 = sshll.u32 (!%p237_p12), %s703_s22, 6 }
  0x1a   : > { %240 = sbr.rel (%p237_p12) target bundleno = 504 (0x1f8), region = 77  ;;  %s710_s15 = sshll.u32 (!%p237_p12), %s995_s12, 3 }
  0x1b   : > { %s245_s16 = scalar_lea.vmem (!%p237_p12), [#allocation2], %s710_s15  ;;  %s711_s6 = sshll.u32 (!%p237_p12), %s995_s12, 2 }
  0x1c   : > { %s269_s8 = scalar_lea.vmem (!%p237_p12), [#allocation3], %s711_s6  ;;  %s1108_s13 = scalar_lea.hbm (!%p237_p12), %s1156_s5, %s730_s7 }
  0x1d   : > { %s639_s9 = sshll.u32 (!%p237_p12), %s269_s8, 4  ;;  %s626_s14 = scalar_lea.sflag (!%p237_p12), [#allocation4], %s995_s12  ;;  %s1110_s9 = int_to_ptr.vmem [resolvable:$true] %s639_s9 }
  0x1e   : > { %s842_s22 = scalar_lea.vmem (!%p237_p12), %s1110_s9, 64  ;;  %s907_s15 = smov (!%p237_p12), [#allocation3]  }
  0x1f   : > { %v834_v2 = vld [vmem:[%s1152_s1] sm:$0xff]   ;;  %vm431_vm0 = vcmask 130048   ;;  %v904_v4 = vmov 0   ;;  %v835_v5 = vld [vmem:[%s1152_s1 + $0x8] sm:$0xff]   ;;  %v836_v6 = vld [vmem:[%s1152_s1 + $0x10] sm:$0xff]   ;;  %v905_v29 = vmov 0.0   ;;  %p843_p13 = scmp.ne.s32.totalorder %s1110_s9, %s842_s22 }
  0x20   : > { %753 = vmatprep.mubr.msk.bf16.mxu0 %vm431_vm0, %v834_v2  ;;  %v833_v3 = vld [vmem:[%s245_s16] sm:$0xff]   ;;  %831 = vset.pattern.permute.xlu0 %v904_v4  ;;  %v303_v7 = vld [vmem:[%s1153_s2 + $0x70] sm:$0xff]  ;;  %v304_v9 = vld [vmem:[%s1153_s2 + $0x78] sm:$0xff]  ;;  %vm906_vm1 = vmmov 0   ;;  %s846_s16 = sshll.u32 %s907_s15, 4  ;;  %s847_s16 = int_to_ptr.vmem [resolvable:$false] %s846_s16 }
  0x21   : > { %832 = vset.pattern.permute.xlu1 %v904_v4  ;;  %751 = vmatprep.subr.bf16.mxu0 %v833_v3  ;;  %v301_v8 = vld [vmem:[%s1153_s2 + $0x60] sm:$0xff]  ;;  %v302_v10 = vld [vmem:[%s1153_s2 + $0x68] sm:$0xff]  ;;  %v837_v11 = vld [vmem:[%s1152_s1 + $0x18] sm:$0xff]   ;;  %p844_p0 = pnand %p843_p13, %p976_p6  ;;  %s848_s17 = scalar_lea.vmem %s847_s16, 128 }
  0x22   : > { %752 = vmatpush3.bf16.msra.mxu0 %v833_v3  ;;  %377 = vperm.xlu0 %831, %v303_v7   ;;  %v838_v12 = vld [vmem:[%s1152_s1 + $0x20] sm:$0xff]   ;;  %v299_v13 = vld [vmem:[%s1153_s2 + $0x50] sm:$0xff]  ;;  %v300_v14 = vld [vmem:[%s1153_s2 + $0x58] sm:$0xff]  ;;  %p849_p2 = scmp.lt.s32.totalorder %s1110_s9, %s847_s16  ;;  %p850_p3 = scmp.lt.s32.totalorder %s848_s17, %s842_s22 }
  0x23   : > { %367 = vperm.xlu1 %832, %v301_v8   ;;  %v297_v15 = vld [vmem:[%s1153_s2 + $0x40] sm:$0xff]  ;;  %v298_v16 = vld [vmem:[%s1153_s2 + $0x48] sm:$0xff]  ;;  %v840_v18 = vld [vmem:[%s1152_s1 + $0x30] sm:$0xff]   ;;  %769 = vmatprep.subr.bf16.mxu1 %v905_v29  ;;  %p845_p1 = pneg %p844_p0 }
  0x24   : > { %v839_v17 = vld [vmem:[%s1152_s1 + $0x28] sm:$0xff]   ;;  %v295_v19 = vld [vmem:[%s1153_s2 + $0x30] sm:$0xff]  ;;  %v296_v20 = vld [vmem:[%s1153_s2 + $0x38] sm:$0xff]  ;;  %785 = vmatprep.mubr.msk.bf16.mxu1 %vm906_vm1, %v905_v29  ;;  %p851_p4 = por %p850_p3, %p849_p2 }
  0x25   : > { %754 = vmatmul.mubr.msk.bf16.vlgmr.msra.gmra.mxu0 %vm431_vm0, %v835_v5  ;;  %v293_v21 = vld [vmem:[%s1153_s2 + $0x20] sm:$0xff]  ;;  %v294_v22 = vld [vmem:[%s1153_s2 + $0x28] sm:$0xff]  ;;  %v841_v23 = vld [vmem:[%s1152_s1 + $0x38] sm:$0xff]  }
  0x26   : > { %757 = vmatprep.mubr.msk.bf16.mxu0 %vm431_vm0, %v836_v6  ;;  %382 = vperm.xlu0 %831, %v304_v9   ;;  %v291_v24 = vld [vmem:[%s1153_s2 + $0x10] sm:$0xff]  ;;  %v292_v25 = vld [vmem:[%s1153_s2 + $0x18] sm:$0xff]  ;;  %v289_v26 = vld [vmem:[%s1153_s2] sm:$0xff]  ;;  %p852_p5 = pnand %p851_p4, %p845_p1 }
  0x27   : > { %372 = vperm.xlu1 %832, %v302_v10   ;;  %v290_v27 = vld [vmem:[%s1153_s2 + $0x8] sm:$0xff]  ;;  %v578_v28 = vld [vmem:[%s1155_s4] sm:$0xf] }
  0x2a   : > { %357 = vperm.xlu0 %831, %v299_v13  }
  0x2b   : > { %362 = vperm.xlu1 %832, %v300_v14  }
  0x2d   : > { %758 = vmatmul.mubr.msk.bf16.gmra.mxu0 %vm431_vm0, %v837_v11 }
  0x2e   : > { %761 = vmatprep.mubr.msk.bf16.mxu0 %vm431_vm0, %v838_v12  ;;  %347 = vperm.xlu0 %831, %v297_v15  }
  0x2f   : > { %352 = vperm.xlu1 %832, %v298_v16  }
  0x32   : > { %337 = vperm.xlu0 %831, %v295_v19  }
  0x33   : > { %342 = vperm.xlu1 %832, %v296_v20  }
  0x35   : > { %762 = vmatmul.mubr.msk.bf16.gmra.mxu0 %vm431_vm0, %v839_v17 }
  0x36   : > { %765 = vmatprep.mubr.msk.bf16.mxu0 %vm431_vm0, %v840_v18  ;;  %327 = vperm.xlu0 %831, %v293_v21  }
  0x37   : > { %332 = vperm.xlu1 %832, %v294_v22  }
  0x3a   : > { %317 = vperm.xlu0 %831, %v291_v24  }
  0x3b   : > { %322 = vperm.xlu1 %832, %v292_v25  }
  0x3d   : > { %766 = vmatmul.mubr.msk.bf16.gmra.mxu0 %vm431_vm0, %v841_v23 }
  0x3e   : > { %307 = vperm.xlu0 %831, %v289_v26  }
  0x3f   : > { %312 = vperm.xlu1 %832, %v290_v27  }
  0x42   : > { %581 = vperm.xlu0 %831, %v578_v28  }
  0x9d   : > { %v378_v36 = vpop.permute.xlu0 %377 }
  0x9e   : > { %v368_v34 = vpop.permute.xlu1 %367 }
  0xa1   : > { %v383_v41 = vpop.permute.xlu0 %382 }
  0xa2   : > { %v373_v39 = vpop.permute.xlu1 %372 }
  0xa5   : > { %v358_v46 = vpop.permute.xlu0 %357 }
  0xa6   : > { %v363_v44 = vpop.permute.xlu1 %362 }
  0xa9   : > { %v348_v52 = vpop.permute.xlu0 %347 }
  0xaa   : > { %v353_v49 = vpop.permute.xlu1 %352 }
  0xad   : > { %v338_v0 = vpop.permute.xlu0 %337 }
  0xae   : > { %v343_v60 = vpop.permute.xlu1 %342 }
  0xb1   : > { %v328_v9 = vpop.permute.xlu0 %327 }
  0xb2   : > { %v333_v6 = vpop.permute.xlu1 %332 }
  0xb5   : > { %v318_v19 = vpop.permute.xlu0 %317 }
  0xb6   : > { %v323_v15 = vpop.permute.xlu1 %322 }
  0xb9   : > { %v308_v28 = vpop.permute.xlu0 %307 }
  0xba   : > { %v313_v25 = vpop.permute.xlu1 %312 }
  0xe5   : > { %v1083_v30 = vpop.f32.mrf.mxu0 }
  0xe6   : > { %v499_v26 = vadd.f32 %v1083_v30, %v318_v19 }
  0xe7   : > { %v1085_v31 = vpop.f32.mrf.mxu0 }
  0xe9   : > { %v756_v32 = vpop.f32.mrf.mxu0 }
  0xea   : > { %v502_v22 = vadd.f32 %v756_v32, %v323_v15 }
  0xeb   : > { %v1087_v33 = vpop.f32.mrf.mxu0 }
  0xed   : > { %v759_v35 = vpop.f32.mrf.mxu0 }
  0xee   : > { %v515_v13 = vadd.f32 %v759_v35, %v338_v0  ;;  %v494_v35 = vadd.f32 %v1087_v33, %v313_v25  ;;  %v569_v33 = vld [vmem:[%s1154_s3] sm:$0x3] }
  0xef   : > { %v506_v37 = vpop.f32.mrf.mxu0 }
  0xf0   : > { %v559_v20 = vmax.f32 %v515_v13, 0.0  ;;  %v507_v21 = vadd.f32 %v506_v37, %v328_v9  ;;  %v555_v37 = vmax.f32 %v499_v26, 0.0 }
  0xf1   : > { %v760_v38 = vpop.f32.mrf.mxu0 }
  0xf2   : > { %v518_v10 = vadd.f32 %v760_v38, %v343_v60  ;;  %v557_v27 = vmax.f32 %v507_v21, 0.0  ;;  %v491_v38 = vadd.f32 %v1085_v31, %v308_v28  ;;  %v582_v31 = vpop.permute.xlu0 %581 }
  0xf3   : > { %v509_v40 = vpop.f32.mrf.mxu0 }
  0xf4   : > { %v560_v16 = vmax.f32 %v518_v10, 0.0  ;;  %v510_v17 = vadd.f32 %v509_v40, %v333_v6  ;;  %v553_v30 = vmax.f32 %v491_v38, 0.0 }
  0xf5   : > { %v763_v42 = vpop.f32.mrf.mxu0 }
  0xf6   : > { %v531_v1 = vadd.f32 %v763_v42, %v358_v46  ;;  %v573_v23 = vpack.c.bf16 %v560_v16, %v559_v20  ;;  %v558_v24 = vmax.f32 %v510_v17, 0.0 }
  0xf7   : > { %v522_v43 = vpop.f32.mrf.mxu0 }
  0xf8   : > { %v563_v7 = vmax.f32 %v531_v1, 0.0  ;;  %v523_v8 = vadd.f32 %v522_v43, %v348_v52 }
  0xf9   : > { %v764_v45 = vpop.f32.mrf.mxu0 }
  0xfa   : > { %v534_v61 = vadd.f32 %v764_v45, %v363_v44  ;;  %v561_v14 = vmax.f32 %v523_v8, 0.0 }
  0xfb   : > { %v525_v47 = vpop.f32.mrf.mxu0 }
  0xfc   : > { %v564_v3 = vmax.f32 %v534_v61, 0.0  ;;  %v526_v4 = vadd.f32 %v525_v47, %v353_v49 }
  0xfd   : > { %v767_v48 = vpop.f32.mrf.mxu0 }
  0xfe   : > { %v547_v51 = vadd.f32 %v767_v48, %v378_v36  ;;  %v575_v11 = vpack.c.bf16 %v564_v3, %v563_v7  ;;  %v562_v12 = vmax.f32 %v526_v4, 0.0  ;;  %v572_v36 = vpack.c.bf16 %v558_v24, %v557_v27 }
  0xff   : > { %v538_v50 = vpop.f32.mrf.mxu0 }
 0x100   : > { %v567_v56 = vmax.f32 %v547_v51, 0.0  ;;  %v539_v57 = vadd.f32 %v538_v50, %v368_v34  ;;  %v574_v18 = vpack.c.bf16 %v562_v12, %v561_v14  ;;  %v556_v34 = vmax.f32 %v502_v22, 0.0 }
 0x101   : > { %v768_v53 = vpop.f32.mrf.mxu0 }
 0x102   : > { %v550_v54 = vadd.f32 %v768_v53, %v383_v41  ;;  %v565_v2 = vmax.f32 %v539_v57, 0.0  ;;  %v571_v32 = vpack.c.bf16 %v556_v34, %v555_v37 }
 0x103   : > { %v541_v55 = vpop.f32.mrf.mxu0 }
 0x104   : > { %v568_v58 = vmax.f32 %v550_v54, 0.0  ;;  %v542_v59 = vadd.f32 %v541_v55, %v373_v39  ;;  %v554_v39 = vmax.f32 %v494_v35, 0.0 }
 0x106   : > { %v566_v62 = vmax.f32 %v542_v59, 0.0  ;;  %v577_v63 = vpack.c.bf16 %v568_v58, %v567_v56  ;;  %v570_v40 = vpack.c.bf16 %v554_v39, %v553_v30 }
 0x108   : > { %770 = vmatpush3.bf16.msra.mxu1 %v577_v63  ;;  %v576_v5 = vpack.c.bf16 %v566_v62, %v565_v2 }
 0x109   : > { %771 = vmatprep.subr.bf16.mxu1 %v905_v29 }
 0x10c   : > { %772 = vmatpush3.bf16.msra.mxu1 %v576_v5 }
 0x10d   : > { %773 = vmatprep.subr.bf16.mxu1 %v905_v29 }
 0x110   : > { %774 = vmatpush3.bf16.msra.mxu1 %v575_v11 }
 0x111   : > { %775 = vmatprep.subr.bf16.mxu1 %v905_v29 }
 0x114   : > { %776 = vmatpush3.bf16.msra.mxu1 %v574_v18 }
 0x115   : > { %777 = vmatprep.subr.bf16.mxu1 %v905_v29 }
 0x118   : > { %778 = vmatpush3.bf16.msra.mxu1 %v573_v23 }
 0x119   : > { %779 = vmatprep.subr.bf16.mxu1 %v905_v29 }
 0x11c   : > { %780 = vmatpush3.bf16.msra.mxu1 %v572_v36 }
 0x11d   : > { %781 = vmatprep.subr.bf16.mxu1 %v905_v29 }
 0x120   : > { %782 = vmatpush3.bf16.msra.mxu1 %v571_v32 }
 0x121   : > { %783 = vmatprep.subr.bf16.mxu1 %v905_v29 }
 0x124   : > { %784 = vmatpush3.bf16.msra.mxu1 %v570_v40 }
 0x127   : > { %786 = vmatmul.mubr.bf16.vlgmr.msra.gmra.mxu1 %v569_v33 }
 0x1e7   : > { %v618_v41 = vpop.f32.mrf.mxu1 }
 0x1e8   : > { %v619_v42 = vadd.f32 %v618_v41, %v582_v31 }
 0x1e9   : > { %v787_v29 = vpop.f32.mrf.mxu1 }
 0x1ea   : > { %624 = vst [vmem:[%s269_s8] sm:$0xf] %v619_v42 }
 0x1eb   : > { %v621_v43 = vpop.f32.mrf.mxu1 }
 0x1ec   : > { %855 = shalt.err (!%p852_p5)
}
 0x1ed   : > { %s856_s23 = scalar_lea.hbm %s1108_s13, 64  ;;  %s860_s26 = scalar_lea.hbm %s1156_s5, 128 }
 0x1ee   : > { %p857_p7 = scmp.ne.s32.totalorder %s1108_s13, %s856_s23  ;;  %p861_p12 = scmp.lt.s32.totalorder %s1108_s13, %s1156_s5 }
 0x1ef   : > { %p862_p13 = scmp.lt.s32.totalorder %s860_s26, %s856_s23 }
 0x1f0   : > { %p858_p10 = pnand %p857_p7, %p976_p6 }
 0x1f1   : > { %p863_p0 = por %p862_p13, %p861_p12 }
 0x1f2   : > { %p859_p11 = pneg %p858_p10 }
 0x1f4   : > { %p864_p1 = pnand %p863_p0, %p859_p11 }
 0x1f6   : > { %867 = shalt.err (!%p864_p1)
}
 0x1f7   : > { %789 = dma.vmem_to_hbm [thread:$0]  (%p976_p6), %s1110_s9, 64, %s1108_s13, %s626_s14   ;;  %v788_v44 = vpop.f32.mrf.mxu1 }
 0x1f8 PF: > { %s651_s7 = sand.u32 1, %s890_s18   ;;  %p792_p2 = pnand %p706_p9, %p980_p8 }
 0x1f9   : > { %s652_s8 = scalar_lea.sflag [#allocation4], %s651_s7 }
 0x1fa   : > { %p793_p3 = pneg %p792_p2 }
 0x1fc   : > { %885 = dma.done.wait (%p793_p3), %s652_s8, 64  }
 0x1fd   : > { %887 = vsyncadd (%p793_p3), %s652_s8, 4294967232  ;;  %p15_p4 = scmp.ge.s32.totalorder %s961_s24, 4   ;;  %s1159_s18 = smov %s894_s19 }
 0x1fe   : > { %s1160_s19 = smov %s898_s20  ;;  %s1161_s20 = smov %s974_s27 }
 0x1ff   : > { %s1162_s21 = smov %s961_s24  ;;  %17 = sbr.rel (!%p15_p4) target bundleno = 3 (0x3), region = 121 }
 0x204   :  { %657 = vsyncpa [#allocation4], 1 }
 0x205   :  { %659 = vsyncpa [#allocation4 + $0x1], 1 }

</bundles_post_ra>
